<compile_context>
chip_gen: v5e
topology: v5e:2x2
jax: 0.10.0
libtpu: 0.0.40
codegen_flags: <defaults>
</compile_context>

<pallas_src>
import jax
import jax.numpy as jnp
from jax import lax
from jax.experimental import pallas as pl
from jax.experimental.pallas import tpu as pltpu

INPUT_SIZE = 3
HIDDEN_SIZE = 2


def rnn_linear_kernel(x_ref, h0_ref, p_ref, pred_ref, hout_ref):
    """Fused tanh-RNN (I=3, H=2, 1 layer) + Linear(2 -> 1).

    x_ref   : (I, S, B) VMEM  -- feature-major input (batch on lanes)
    h0_ref  : (H, B)    VMEM  -- initial hidden state, hidden-major
    p_ref   : (15,)     SMEM  -- packed params:
                [0:6]   w_ih (2,3) row-major
                [6:10]  w_hh (2,2) row-major
                [10:12] b_ih + b_hh (pre-summed)
                [12:14] w_out (1,2)
                [14]    b_out
    pred_ref: (S, B)    VMEM  -- prediction slab
    hout_ref: (H, B)    VMEM  -- final hidden state
    """
    seq_len = x_ref.shape[1]

    # --- Scalar parameters: cheap SMEM scalar loads, no vector-layout cost.
    w00 = p_ref[0]; w01 = p_ref[1]; w02 = p_ref[2]
    w10 = p_ref[3]; w11 = p_ref[4]; w12 = p_ref[5]
    u00 = p_ref[6]; u01 = p_ref[7]
    u10 = p_ref[8]; u11 = p_ref[9]
    b0 = p_ref[10]; b1 = p_ref[11]
    v0 = p_ref[12]; v1 = p_ref[13]
    c = p_ref[14]

    x0 = x_ref[0]                                       # (S, B) static views
    x1 = x_ref[1]
    x2 = x_ref[2]

    # --- Input projection for ALL timesteps at once (no recurrence dep).
    ih0 = x0 * w00 + x1 * w01 + x2 * w02 + b0           # (S, B)
    ih1 = x0 * w10 + x1 * w11 + x2 * w12 + b1           # (S, B)

    h0v = h0_ref[0:1, :]                                # (1, B)
    h1v = h0_ref[1:2, :]                                # (1, B)

    # --- Fully unrolled serial recurrence (S is small and static).  Only the
    #     2x2 hidden FMAs + tanh sit on the serial dependency chain; the
    #     per-step output-projection FMAs hide under the next step's tanh.
    #     Guard for scaling: if S grows beyond a few dozen, switch to
    #     lax.fori_loop(..., unroll=8) with ih0/ih1 in VMEM scratch (or chunk
    #     S on an "arbitrary" grid axis carrying h in scratch) to bound vreg
    #     live ranges, compile time, and per-generation VMEM (64 MiB on v7x).
    pred_rows = []
    for t in range(seq_len):
        a0 = ih0[t:t + 1, :] + h0v * u00 + h1v * u01    # (1, B)
        a1 = ih1[t:t + 1, :] + h0v * u10 + h1v * u11    # (1, B)
        # Two independent tanh pushes pipeline back-to-back through the EUP.
        h0v = jnp.tanh(a0)
        h1v = jnp.tanh(a1)
        # Output Linear(2 -> 1), per step, off the serial chain.
        pred_rows.append(h0v * v0 + h1v * v1 + c)       # (1, B)

    # Single lane-dense (S, B) slab store (one vst, not S partial stores).
    pred_ref[...] = jnp.concatenate(pred_rows, axis=0)

    # Single full-ref store of the final hidden state.
    hout_ref[...] = jnp.concatenate([h0v, h1v], axis=0)  # (H, B)


def net_forward(x, h0, params):
    # x: (S, B, I) float32; h0: (1, B, H) float32
    S, B, I = x.shape
    assert I == INPUT_SIZE

    vmem = pl.BlockSpec(memory_space=pltpu.MemorySpace.VMEM)
    smem = pl.BlockSpec(memory_space=pltpu.MemorySpace.SMEM)

    # One feature-major input tensor: one DMA instead of 3 strided slices.
    x_fmaj = jnp.transpose(x, (2, 0, 1))                 # (I, S, B)
    h0t = jnp.transpose(h0[0], (1, 0))                   # (H, B)

    # Pack all parameters into one tiny 1-D SMEM array (pads to 64 B total),
    # pre-summing the two RNN biases.
    packed = jnp.concatenate([
        params["w_ih"].reshape(-1),                      # 6
        params["w_hh"].reshape(-1),                      # 4
        (params["b_ih"] + params["b_hh"]).reshape(-1),   # 2
        params["w_out"].reshape(-1),                     # 2
        params["b_out"].reshape(-1),                     # 1
    ]).astype(jnp.float32)

    pred_sb, hout_hb = pl.pallas_call(
        rnn_linear_kernel,
        out_shape=(jax.ShapeDtypeStruct((S, B), jnp.float32),
                   jax.ShapeDtypeStruct((HIDDEN_SIZE, B), jnp.float32)),
        in_specs=[vmem, vmem, smem],
        out_specs=(vmem, vmem),
    )(x_fmaj, h0t, packed)

    prediction = pred_sb[:, :, None]                     # (S, B, 1)
    h_out = jnp.transpose(hout_hb, (1, 0))[None]         # (1, B, H)
    return prediction, h_out


def init_params(key):
    # PyTorch init: U(-1/sqrt(hidden), 1/sqrt(hidden)) for RNN params,
    #               U(-1/sqrt(in_features), 1/sqrt(in_features)) for Linear.
    k_rnn = 1.0 / jnp.sqrt(jnp.float32(HIDDEN_SIZE))
    k_lin = 1.0 / jnp.sqrt(jnp.float32(HIDDEN_SIZE))
    ks = jax.random.split(key, 6)
    u = lambda k, shape, bound: jax.random.uniform(
        k, shape, jnp.float32, minval=-bound, maxval=bound)
    return {
        "w_ih":  u(ks[0], (HIDDEN_SIZE, INPUT_SIZE), k_rnn),
        "w_hh":  u(ks[1], (HIDDEN_SIZE, HIDDEN_SIZE), k_rnn),
        "b_ih":  u(ks[2], (HIDDEN_SIZE,), k_rnn),
        "b_hh":  u(ks[3], (HIDDEN_SIZE,), k_rnn),
        "w_out": u(ks[4], (1, HIDDEN_SIZE), k_lin),
        "b_out": u(ks[5], (1,), k_lin),
    }


def reference_forward(x, h0, p):
    # Pure-JAX reference with identical semantics (sanity check).
    def step(h, x_t):
        h_new = jnp.tanh(x_t @ p["w_ih"].T + h @ p["w_hh"].T
                         + p["b_ih"] + p["b_hh"])
        return h_new, h_new
    h_final, outs = lax.scan(step, h0[0], x)
    pred = outs @ p["w_out"].T + p["b_out"]              # (S, B, 1)
    return pred, h_final[None]


if __name__ == "__main__":
    key = jax.random.PRNGKey(0)
    k_params, k_x = jax.random.split(key)

    S, B = 8, 2                          # small seq / batch
    params = init_params(k_params)
    x = jax.random.normal(k_x, (S, B, INPUT_SIZE), dtype=jnp.float32)
    h0 = jnp.zeros((1, B, HIDDEN_SIZE), dtype=jnp.float32)

    pred, h_out = net_forward(x, h0, params)
    jax.block_until_ready((pred, h_out))

    pred_ref, h_ref = reference_forward(x, h0, params)
    assert pred.shape == (S, B, 1) and h_out.shape == (1, B, HIDDEN_SIZE)
    assert jnp.allclose(pred, pred_ref, atol=1e-5), "prediction mismatch"
    assert jnp.allclose(h_out, h_ref, atol=1e-5), "hidden-state mismatch"

    print("KERNEL_OK")
</pallas_src>

<mosaic_0001>
module attributes {stable_mosaic.version = 11 : i64} {
  func.func @rnn_linear_kernel(%arg0: memref<3x8x2xf32, #tpu.memory_space<vmem>>, %arg1: memref<2x2xf32, #tpu.memory_space<vmem>>, %arg2: memref<15xf32, #tpu.memory_space<smem>>, %arg3: memref<8x2xf32, #tpu.memory_space<vmem>>, %arg4: memref<2x2xf32, #tpu.memory_space<vmem>>) attributes {dimension_semantics = [], scalar_prefetch = 0 : i64, scratch_operands = 0 : i64, tpu.core_type = #tpu.core_type<tc>} {
    %c0 = arith.constant 0 : index
    %0 = memref.load %arg2[%c0] : memref<15xf32, #tpu.memory_space<smem>>
    %c1 = arith.constant 1 : index
    %1 = memref.load %arg2[%c1] : memref<15xf32, #tpu.memory_space<smem>>
    %c2 = arith.constant 2 : index
    %2 = memref.load %arg2[%c2] : memref<15xf32, #tpu.memory_space<smem>>
    %c3 = arith.constant 3 : index
    %3 = memref.load %arg2[%c3] : memref<15xf32, #tpu.memory_space<smem>>
    %c4 = arith.constant 4 : index
    %4 = memref.load %arg2[%c4] : memref<15xf32, #tpu.memory_space<smem>>
    %c5 = arith.constant 5 : index
    %5 = memref.load %arg2[%c5] : memref<15xf32, #tpu.memory_space<smem>>
    %c6 = arith.constant 6 : index
    %6 = memref.load %arg2[%c6] : memref<15xf32, #tpu.memory_space<smem>>
    %c7 = arith.constant 7 : index
    %7 = memref.load %arg2[%c7] : memref<15xf32, #tpu.memory_space<smem>>
    %c8 = arith.constant 8 : index
    %8 = memref.load %arg2[%c8] : memref<15xf32, #tpu.memory_space<smem>>
    %c9 = arith.constant 9 : index
    %9 = memref.load %arg2[%c9] : memref<15xf32, #tpu.memory_space<smem>>
    %c10 = arith.constant 10 : index
    %10 = memref.load %arg2[%c10] : memref<15xf32, #tpu.memory_space<smem>>
    %c11 = arith.constant 11 : index
    %11 = memref.load %arg2[%c11] : memref<15xf32, #tpu.memory_space<smem>>
    %c12 = arith.constant 12 : index
    %12 = memref.load %arg2[%c12] : memref<15xf32, #tpu.memory_space<smem>>
    %c13 = arith.constant 13 : index
    %13 = memref.load %arg2[%c13] : memref<15xf32, #tpu.memory_space<smem>>
    %c14 = arith.constant 14 : index
    %14 = memref.load %arg2[%c14] : memref<15xf32, #tpu.memory_space<smem>>
    %c0_0 = arith.constant 0 : index
    %c0_1 = arith.constant 0 : index
    %c0_2 = arith.constant 0 : index
    %15 = vector.load %arg0[%c0_0, %c0_1, %c0_2] : memref<3x8x2xf32, #tpu.memory_space<vmem>>, vector<1x8x2xf32>
    %16 = vector.shape_cast %15 : vector<1x8x2xf32> to vector<8x2xf32>
    %c1_3 = arith.constant 1 : index
    %c0_4 = arith.constant 0 : index
    %c0_5 = arith.constant 0 : index
    %17 = vector.load %arg0[%c1_3, %c0_4, %c0_5] : memref<3x8x2xf32, #tpu.memory_space<vmem>>, vector<1x8x2xf32>
    %18 = vector.shape_cast %17 : vector<1x8x2xf32> to vector<8x2xf32>
    %c2_6 = arith.constant 2 : index
    %c0_7 = arith.constant 0 : index
    %c0_8 = arith.constant 0 : index
    %19 = vector.load %arg0[%c2_6, %c0_7, %c0_8] : memref<3x8x2xf32, #tpu.memory_space<vmem>>, vector<1x8x2xf32>
    %20 = vector.shape_cast %19 : vector<1x8x2xf32> to vector<8x2xf32>
    %21 = vector.broadcast %0 : f32 to vector<8x2xf32>
    %22 = arith.mulf %16, %21 : vector<8x2xf32>
    %23 = vector.broadcast %1 : f32 to vector<8x2xf32>
    %24 = arith.mulf %18, %23 : vector<8x2xf32>
    %25 = arith.addf %22, %24 : vector<8x2xf32>
    %26 = vector.broadcast %2 : f32 to vector<8x2xf32>
    %27 = arith.mulf %20, %26 : vector<8x2xf32>
    %28 = arith.addf %25, %27 : vector<8x2xf32>
    %29 = vector.broadcast %10 : f32 to vector<8x2xf32>
    %30 = arith.addf %28, %29 : vector<8x2xf32>
    %31 = vector.broadcast %3 : f32 to vector<8x2xf32>
    %32 = arith.mulf %16, %31 : vector<8x2xf32>
    %33 = vector.broadcast %4 : f32 to vector<8x2xf32>
    %34 = arith.mulf %18, %33 : vector<8x2xf32>
    %35 = arith.addf %32, %34 : vector<8x2xf32>
    %36 = vector.broadcast %5 : f32 to vector<8x2xf32>
    %37 = arith.mulf %20, %36 : vector<8x2xf32>
    %38 = arith.addf %35, %37 : vector<8x2xf32>
    %39 = vector.broadcast %11 : f32 to vector<8x2xf32>
    %40 = arith.addf %38, %39 : vector<8x2xf32>
    %c0_9 = arith.constant 0 : index
    %c0_10 = arith.constant 0 : index
    %41 = vector.load %arg1[%c0_9, %c0_10] : memref<2x2xf32, #tpu.memory_space<vmem>>, vector<1x2xf32>
    %c1_11 = arith.constant 1 : index
    %c0_12 = arith.constant 0 : index
    %42 = vector.load %arg1[%c1_11, %c0_12] : memref<2x2xf32, #tpu.memory_space<vmem>>, vector<1x2xf32>
    %43 = vector.extract_strided_slice %30 {offsets = [0, 0], sizes = [1, 2], strides = [1, 1]} : vector<8x2xf32> to vector<1x2xf32>
    %44 = vector.broadcast %6 : f32 to vector<1x2xf32>
    %45 = arith.mulf %41, %44 : vector<1x2xf32>
    %46 = arith.addf %43, %45 : vector<1x2xf32>
    %47 = vector.broadcast %7 : f32 to vector<1x2xf32>
    %48 = arith.mulf %42, %47 : vector<1x2xf32>
    %49 = arith.addf %46, %48 : vector<1x2xf32>
    %50 = vector.extract_strided_slice %40 {offsets = [0, 0], sizes = [1, 2], strides = [1, 1]} : vector<8x2xf32> to vector<1x2xf32>
    %51 = vector.broadcast %8 : f32 to vector<1x2xf32>
    %52 = arith.mulf %41, %51 : vector<1x2xf32>
    %53 = arith.addf %50, %52 : vector<1x2xf32>
    %54 = vector.broadcast %9 : f32 to vector<1x2xf32>
    %55 = arith.mulf %42, %54 : vector<1x2xf32>
    %56 = arith.addf %53, %55 : vector<1x2xf32>
    %57 = math.tanh %49 : vector<1x2xf32>
    %58 = math.tanh %56 : vector<1x2xf32>
    %59 = vector.broadcast %12 : f32 to vector<1x2xf32>
    %60 = arith.mulf %57, %59 : vector<1x2xf32>
    %61 = vector.broadcast %13 : f32 to vector<1x2xf32>
    %62 = arith.mulf %58, %61 : vector<1x2xf32>
    %63 = arith.addf %60, %62 : vector<1x2xf32>
    %64 = vector.broadcast %14 : f32 to vector<1x2xf32>
    %65 = arith.addf %63, %64 : vector<1x2xf32>
    %66 = vector.extract_strided_slice %30 {offsets = [1, 0], sizes = [1, 2], strides = [1, 1]} : vector<8x2xf32> to vector<1x2xf32>
    %67 = vector.broadcast %6 : f32 to vector<1x2xf32>
    %68 = arith.mulf %57, %67 : vector<1x2xf32>
    %69 = arith.addf %66, %68 : vector<1x2xf32>
    %70 = vector.broadcast %7 : f32 to vector<1x2xf32>
    %71 = arith.mulf %58, %70 : vector<1x2xf32>
    %72 = arith.addf %69, %71 : vector<1x2xf32>
    %73 = vector.extract_strided_slice %40 {offsets = [1, 0], sizes = [1, 2], strides = [1, 1]} : vector<8x2xf32> to vector<1x2xf32>
    %74 = vector.broadcast %8 : f32 to vector<1x2xf32>
    %75 = arith.mulf %57, %74 : vector<1x2xf32>
    %76 = arith.addf %73, %75 : vector<1x2xf32>
    %77 = vector.broadcast %9 : f32 to vector<1x2xf32>
    %78 = arith.mulf %58, %77 : vector<1x2xf32>
    %79 = arith.addf %76, %78 : vector<1x2xf32>
    %80 = math.tanh %72 : vector<1x2xf32>
    %81 = math.tanh %79 : vector<1x2xf32>
    %82 = vector.broadcast %12 : f32 to vector<1x2xf32>
    %83 = arith.mulf %80, %82 : vector<1x2xf32>
    %84 = vector.broadcast %13 : f32 to vector<1x2xf32>
    %85 = arith.mulf %81, %84 : vector<1x2xf32>
    %86 = arith.addf %83, %85 : vector<1x2xf32>
    %87 = vector.broadcast %14 : f32 to vector<1x2xf32>
    %88 = arith.addf %86, %87 : vector<1x2xf32>
    %89 = vector.extract_strided_slice %30 {offsets = [2, 0], sizes = [1, 2], strides = [1, 1]} : vector<8x2xf32> to vector<1x2xf32>
    %90 = vector.broadcast %6 : f32 to vector<1x2xf32>
    %91 = arith.mulf %80, %90 : vector<1x2xf32>
    %92 = arith.addf %89, %91 : vector<1x2xf32>
    %93 = vector.broadcast %7 : f32 to vector<1x2xf32>
    %94 = arith.mulf %81, %93 : vector<1x2xf32>
    %95 = arith.addf %92, %94 : vector<1x2xf32>
    %96 = vector.extract_strided_slice %40 {offsets = [2, 0], sizes = [1, 2], strides = [1, 1]} : vector<8x2xf32> to vector<1x2xf32>
    %97 = vector.broadcast %8 : f32 to vector<1x2xf32>
    %98 = arith.mulf %80, %97 : vector<1x2xf32>
    %99 = arith.addf %96, %98 : vector<1x2xf32>
    %100 = vector.broadcast %9 : f32 to vector<1x2xf32>
    %101 = arith.mulf %81, %100 : vector<1x2xf32>
    %102 = arith.addf %99, %101 : vector<1x2xf32>
    %103 = math.tanh %95 : vector<1x2xf32>
    %104 = math.tanh %102 : vector<1x2xf32>
    %105 = vector.broadcast %12 : f32 to vector<1x2xf32>
    %106 = arith.mulf %103, %105 : vector<1x2xf32>
    %107 = vector.broadcast %13 : f32 to vector<1x2xf32>
    %108 = arith.mulf %104, %107 : vector<1x2xf32>
    %109 = arith.addf %106, %108 : vector<1x2xf32>
    %110 = vector.broadcast %14 : f32 to vector<1x2xf32>
    %111 = arith.addf %109, %110 : vector<1x2xf32>
    %112 = vector.extract_strided_slice %30 {offsets = [3, 0], sizes = [1, 2], strides = [1, 1]} : vector<8x2xf32> to vector<1x2xf32>
    %113 = vector.broadcast %6 : f32 to vector<1x2xf32>
    %114 = arith.mulf %103, %113 : vector<1x2xf32>
    %115 = arith.addf %112, %114 : vector<1x2xf32>
    %116 = vector.broadcast %7 : f32 to vector<1x2xf32>
    %117 = arith.mulf %104, %116 : vector<1x2xf32>
    %118 = arith.addf %115, %117 : vector<1x2xf32>
    %119 = vector.extract_strided_slice %40 {offsets = [3, 0], sizes = [1, 2], strides = [1, 1]} : vector<8x2xf32> to vector<1x2xf32>
    %120 = vector.broadcast %8 : f32 to vector<1x2xf32>
    %121 = arith.mulf %103, %120 : vector<1x2xf32>
    %122 = arith.addf %119, %121 : vector<1x2xf32>
    %123 = vector.broadcast %9 : f32 to vector<1x2xf32>
    %124 = arith.mulf %104, %123 : vector<1x2xf32>
    %125 = arith.addf %122, %124 : vector<1x2xf32>
    %126 = math.tanh %118 : vector<1x2xf32>
    %127 = math.tanh %125 : vector<1x2xf32>
    %128 = vector.broadcast %12 : f32 to vector<1x2xf32>
    %129 = arith.mulf %126, %128 : vector<1x2xf32>
    %130 = vector.broadcast %13 : f32 to vector<1x2xf32>
    %131 = arith.mulf %127, %130 : vector<1x2xf32>
    %132 = arith.addf %129, %131 : vector<1x2xf32>
    %133 = vector.broadcast %14 : f32 to vector<1x2xf32>
    %134 = arith.addf %132, %133 : vector<1x2xf32>
    %135 = vector.extract_strided_slice %30 {offsets = [4, 0], sizes = [1, 2], strides = [1, 1]} : vector<8x2xf32> to vector<1x2xf32>
    %136 = vector.broadcast %6 : f32 to vector<1x2xf32>
    %137 = arith.mulf %126, %136 : vector<1x2xf32>
    %138 = arith.addf %135, %137 : vector<1x2xf32>
    %139 = vector.broadcast %7 : f32 to vector<1x2xf32>
    %140 = arith.mulf %127, %139 : vector<1x2xf32>
    %141 = arith.addf %138, %140 : vector<1x2xf32>
    %142 = vector.extract_strided_slice %40 {offsets = [4, 0], sizes = [1, 2], strides = [1, 1]} : vector<8x2xf32> to vector<1x2xf32>
    %143 = vector.broadcast %8 : f32 to vector<1x2xf32>
    %144 = arith.mulf %126, %143 : vector<1x2xf32>
    %145 = arith.addf %142, %144 : vector<1x2xf32>
    %146 = vector.broadcast %9 : f32 to vector<1x2xf32>
    %147 = arith.mulf %127, %146 : vector<1x2xf32>
    %148 = arith.addf %145, %147 : vector<1x2xf32>
    %149 = math.tanh %141 : vector<1x2xf32>
    %150 = math.tanh %148 : vector<1x2xf32>
    %151 = vector.broadcast %12 : f32 to vector<1x2xf32>
    %152 = arith.mulf %149, %151 : vector<1x2xf32>
    %153 = vector.broadcast %13 : f32 to vector<1x2xf32>
    %154 = arith.mulf %150, %153 : vector<1x2xf32>
    %155 = arith.addf %152, %154 : vector<1x2xf32>
    %156 = vector.broadcast %14 : f32 to vector<1x2xf32>
    %157 = arith.addf %155, %156 : vector<1x2xf32>
    %158 = vector.extract_strided_slice %30 {offsets = [5, 0], sizes = [1, 2], strides = [1, 1]} : vector<8x2xf32> to vector<1x2xf32>
    %159 = vector.broadcast %6 : f32 to vector<1x2xf32>
    %160 = arith.mulf %149, %159 : vector<1x2xf32>
    %161 = arith.addf %158, %160 : vector<1x2xf32>
    %162 = vector.broadcast %7 : f32 to vector<1x2xf32>
    %163 = arith.mulf %150, %162 : vector<1x2xf32>
    %164 = arith.addf %161, %163 : vector<1x2xf32>
    %165 = vector.extract_strided_slice %40 {offsets = [5, 0], sizes = [1, 2], strides = [1, 1]} : vector<8x2xf32> to vector<1x2xf32>
    %166 = vector.broadcast %8 : f32 to vector<1x2xf32>
    %167 = arith.mulf %149, %166 : vector<1x2xf32>
    %168 = arith.addf %165, %167 : vector<1x2xf32>
    %169 = vector.broadcast %9 : f32 to vector<1x2xf32>
    %170 = arith.mulf %150, %169 : vector<1x2xf32>
    %171 = arith.addf %168, %170 : vector<1x2xf32>
    %172 = math.tanh %164 : vector<1x2xf32>
    %173 = math.tanh %171 : vector<1x2xf32>
    %174 = vector.broadcast %12 : f32 to vector<1x2xf32>
    %175 = arith.mulf %172, %174 : vector<1x2xf32>
    %176 = vector.broadcast %13 : f32 to vector<1x2xf32>
    %177 = arith.mulf %173, %176 : vector<1x2xf32>
    %178 = arith.addf %175, %177 : vector<1x2xf32>
    %179 = vector.broadcast %14 : f32 to vector<1x2xf32>
    %180 = arith.addf %178, %179 : vector<1x2xf32>
    %181 = vector.extract_strided_slice %30 {offsets = [6, 0], sizes = [1, 2], strides = [1, 1]} : vector<8x2xf32> to vector<1x2xf32>
    %182 = vector.broadcast %6 : f32 to vector<1x2xf32>
    %183 = arith.mulf %172, %182 : vector<1x2xf32>
    %184 = arith.addf %181, %183 : vector<1x2xf32>
    %185 = vector.broadcast %7 : f32 to vector<1x2xf32>
    %186 = arith.mulf %173, %185 : vector<1x2xf32>
    %187 = arith.addf %184, %186 : vector<1x2xf32>
    %188 = vector.extract_strided_slice %40 {offsets = [6, 0], sizes = [1, 2], strides = [1, 1]} : vector<8x2xf32> to vector<1x2xf32>
    %189 = vector.broadcast %8 : f32 to vector<1x2xf32>
    %190 = arith.mulf %172, %189 : vector<1x2xf32>
    %191 = arith.addf %188, %190 : vector<1x2xf32>
    %192 = vector.broadcast %9 : f32 to vector<1x2xf32>
    %193 = arith.mulf %173, %192 : vector<1x2xf32>
    %194 = arith.addf %191, %193 : vector<1x2xf32>
    %195 = math.tanh %187 : vector<1x2xf32>
    %196 = math.tanh %194 : vector<1x2xf32>
    %197 = vector.broadcast %12 : f32 to vector<1x2xf32>
    %198 = arith.mulf %195, %197 : vector<1x2xf32>
    %199 = vector.broadcast %13 : f32 to vector<1x2xf32>
    %200 = arith.mulf %196, %199 : vector<1x2xf32>
    %201 = arith.addf %198, %200 : vector<1x2xf32>
    %202 = vector.broadcast %14 : f32 to vector<1x2xf32>
    %203 = arith.addf %201, %202 : vector<1x2xf32>
    %204 = vector.extract_strided_slice %30 {offsets = [7, 0], sizes = [1, 2], strides = [1, 1]} : vector<8x2xf32> to vector<1x2xf32>
    %205 = vector.broadcast %6 : f32 to vector<1x2xf32>
    %206 = arith.mulf %195, %205 : vector<1x2xf32>
    %207 = arith.addf %204, %206 : vector<1x2xf32>
    %208 = vector.broadcast %7 : f32 to vector<1x2xf32>
    %209 = arith.mulf %196, %208 : vector<1x2xf32>
    %210 = arith.addf %207, %209 : vector<1x2xf32>
    %211 = vector.extract_strided_slice %40 {offsets = [7, 0], sizes = [1, 2], strides = [1, 1]} : vector<8x2xf32> to vector<1x2xf32>
    %212 = vector.broadcast %8 : f32 to vector<1x2xf32>
    %213 = arith.mulf %195, %212 : vector<1x2xf32>
    %214 = arith.addf %211, %213 : vector<1x2xf32>
    %215 = vector.broadcast %9 : f32 to vector<1x2xf32>
    %216 = arith.mulf %196, %215 : vector<1x2xf32>
    %217 = arith.addf %214, %216 : vector<1x2xf32>
    %218 = math.tanh %210 : vector<1x2xf32>
    %219 = math.tanh %217 : vector<1x2xf32>
    %220 = vector.broadcast %12 : f32 to vector<1x2xf32>
    %221 = arith.mulf %218, %220 : vector<1x2xf32>
    %222 = vector.broadcast %13 : f32 to vector<1x2xf32>
    %223 = arith.mulf %219, %222 : vector<1x2xf32>
    %224 = arith.addf %221, %223 : vector<1x2xf32>
    %225 = vector.broadcast %14 : f32 to vector<1x2xf32>
    %226 = arith.addf %224, %225 : vector<1x2xf32>
    %227 = tpu.concatenate %65, %88, %111, %134, %157, %180, %203, %226 in 0 : vector<1x2xf32>, vector<1x2xf32>, vector<1x2xf32>, vector<1x2xf32>, vector<1x2xf32>, vector<1x2xf32>, vector<1x2xf32>, vector<1x2xf32> -> vector<8x2xf32>
    %c0_13 = arith.constant 0 : index
    %c0_14 = arith.constant 0 : index
    %228 = vector.load %arg3[%c0_13, %c0_14] : memref<8x2xf32, #tpu.memory_space<vmem>>, vector<8x2xf32>
    tpu.vector_store %arg3[%c0_13, %c0_14], %227 {strides = array<i32>} : memref<8x2xf32, #tpu.memory_space<vmem>>, vector<8x2xf32>,
    %229 = tpu.concatenate %218, %219 in 0 : vector<1x2xf32>, vector<1x2xf32> -> vector<2x2xf32>
    %c0_15 = arith.constant 0 : index
    %c0_16 = arith.constant 0 : index
    %230 = vector.load %arg4[%c0_15, %c0_16] : memref<2x2xf32, #tpu.memory_space<vmem>>, vector<2x2xf32>
    tpu.vector_store %arg4[%c0_15, %c0_16], %229 {strides = array<i32>} : memref<2x2xf32, #tpu.memory_space<vmem>>, vector<2x2xf32>,
    return
  }
}

</mosaic_0001>

<bundles_post_ra>
// kernel: tpu_custom_call.1
= control target key start
LH: loop header
LB: loop body
LE: loop exit
PB: predicated region body
PF: predicated region fallthrough
CT: control target
= control target key end

     0   :  { %10 = vsyncpa [#allocation4], 0  ;;  %s584_s0 = inlined_call_operand.vmem [shape: f32[3,8,2], index: 0, kind: input, shape index: {}]   ;;  %s585_s1 = inlined_call_operand.vmem [shape: f32[2,2], index: 1, kind: input, shape index: {}]   ;;  %s586_s2 = inlined_call_operand.vmem [shape: f32[15], index: 2, kind: input, shape index: {}]   ;;  %s587_s3 = inlined_call_operand.vmem [shape: f32[8,2], index: 3, kind: output, shape index: {0}]   ;;  %s588_s4 = inlined_call_operand.hbm [shape: f32[2,2], index: 4, kind: output, shape index: {1}]  }
   0x1   :  { %11 = vsyncpa [#allocation3], 0  ;;  %s21_s17 = sshll.u32 %s586_s2, 4  ;;  %s411_s18 = smov [#allocation2]   ;;  %s22_s17 = int_to_ptr.vmem [resolvable:$true] %s21_s17 }
   0x2   :  { %24 = dma.vmem_to_smem %s22_s17, 16, %s411_s18, [#allocation4]  }
   0x3   :  { %407 = dma.done.wait [#allocation4], 16  }
   0x4   :  { %408 = vsyncadd [#allocation4], 4294967280 }
   0x5   :  { %29 = sfence }
   0x6   :  { %s30_s19 = sld [smem:[#allocation2]]  ;;  %v45_v0 = vld [vmem:[%s584_s0] sm:$0xff]  ;;  %v335_v1 = vld [vmem:[%s584_s0 + $0x8] sm:$0xff]  ;;  %v336_v2 = vld [vmem:[%s584_s0 + $0x10] sm:$0xff]  ;;  %vm275_vm0 = vcmask 1040384   ;;  %vm277_vm1 = vcmask 1041408  }
   0x7   :  { %s321_s20 = sld [smem:[#allocation2 + $0x1]]  ;;  %v70_v16 = vld [vmem:[%s585_s1] sm:$0x1]  ;;  %v71_v20 = vld [vmem:[%s585_s1 + $0x1] sm:$0x1]  ;;  %vm279_vm2 = vcmask 1042432  }
   0x8   :  { %s322_s21 = sld [smem:[#allocation2 + $0x2]]  ;;  %vm281_vm3 = vcmask 1043456   ;;  %vm283_vm4 = vcmask 1044480   ;;  %s412_s15 = smov [#allocation5]   ;;  %vm298_vm5 = vcmask 9216   ;;  %vm285_vm6 = vcmask 1045504  }
   0x9   :  { %s323_s22 = sld [smem:[#allocation2 + $0x3]]  ;;  %s307_s16 = sshll.u32 %s412_s15, 4  ;;  %vm287_vm7 = vcmask 1046528   ;;  %vm289_vm8 = vcmask 15360   ;;  %s308_s16 = int_to_ptr.vmem [resolvable:$true] %s307_s16 }
   0xa   :  { %s324_s23 = sld [smem:[#allocation2 + $0x4]] }
   0xb   :  { %s325_s26 = sld [smem:[#allocation2 + $0x5]] }
   0xc   :  { %s326_s2 = sld [smem:[#allocation2 + $0x6]]  ;;  %v50_v3 = vstv %s30_s19  ;;  %s309_s19 = sshll.u32 %s588_s4, 4  ;;  %s310_s19 = int_to_ptr.hbm [resolvable:$true] %s309_s19 }
   0xd   :  { %s327_s5 = sld [smem:[#allocation2 + $0x7]]  ;;  %v51_v4 = vmul.f32 %v50_v3, %v45_v0  ;;  %v52_v5 = vstv %s321_s20 }
   0xe   :  { %s328_s6 = sld [smem:[#allocation2 + $0x8]]  ;;  %v53_v6 = vmul.f32 %v335_v1, %v52_v5  ;;  %v55_v7 = vstv %s322_s21 }
   0xf   :  { %s329_s7 = sld [smem:[#allocation2 + $0x9]]  ;;  %v56_v8 = vmul.f32 %v336_v2, %v55_v7  ;;  %v60_v9 = vstv %s323_s22 }
  0x10   :  { %s330_s8 = sld [smem:[#allocation2 + $0xa]]  ;;  %v54_v10 = vadd.f32 %v53_v6, %v51_v4  ;;  %v61_v11 = vmul.f32 %v60_v9, %v45_v0  ;;  %v62_v12 = vstv %s324_s23 }
  0x11   :  { %s331_s9 = sld [smem:[#allocation2 + $0xb]]  ;;  %v63_v13 = vmul.f32 %v335_v1, %v62_v12  ;;  %v65_v14 = vstv %s325_s26 }
  0x12   :  { %v66_v15 = vmul.f32 %v336_v2, %v65_v14  ;;  %v453_v17 = vstv %s326_s2  ;;  %v57_v18 = vadd.f32 %v56_v8, %v54_v10  ;;  %s332_s1 = sld [smem:[#allocation2 + $0xc]] }
  0x13   :  { %v64_v19 = vadd.f32 %v63_v13, %v61_v11  ;;  %v458_v21 = vstv %s327_s5  ;;  %v73_v24 = vmul.f32 %v453_v17, %v70_v16  ;;  %s333_s13 = sld [smem:[#allocation2 + $0xd]] }
  0x14   :  { %v460_v22 = vstv %s328_s6  ;;  %v76_v30 = vmul.f32 %v458_v21, %v71_v20  ;;  %s334_s14 = sld [smem:[#allocation2 + $0xe]] }
  0x15   :  { %v67_v23 = vadd.f32 %v66_v15, %v64_v19  ;;  %v463_v25 = vstv %s329_s7  ;;  %v79_v27 = vmul.f32 %v460_v22, %v70_v16 }
  0x16   :  { %v58_v26 = vstv %s330_s8  ;;  %v82_v32 = vmul.f32 %v463_v25, %v71_v20 }
  0x17   :  { %v466_v28 = vadd.f32 %v58_v26, %v57_v18  ;;  %v68_v29 = vstv %s331_s9 }
  0x18   :  { %v469_v31 = vadd.f32 %v68_v29, %v67_v23 }
  0x19   :  { %v74_v33 = vadd.f32 %v73_v24, %v466_v28 }
  0x1a   :  { %v80_v34 = vadd.f32 %v79_v27, %v469_v31 }
  0x1b   :  { %v77_v35 = vadd.f32 %v76_v30, %v74_v33 }
  0x1c   :  { %v83_v36 = vadd.f32 %v82_v32, %v80_v34 }
  0x1d   :  { %339 = vtanh.f32 %v77_v35 }
  0x1e   :  { %341 = vtanh.f32 %v83_v36 }
  0x23   :  { %v474_v37 = vpop.eup %339 }
  0x24   :  { %v476_v38 = vpop.eup %341  ;;  %v93_v39 = vmul.f32 %v474_v37, %v453_v17  ;;  %v103_v40 = vmul.f32 %v474_v37, %v460_v22 }
  0x25   :  { %v98_v41 = vmul.f32 %v476_v38, %v458_v21  ;;  %v108_v42 = vmul.f32 %v476_v38, %v463_v25 }
  0x26   :  { %v95_v43 = vrot.slane %v93_v39, 7  ;;  %v105_v44 = vrot.slane %v103_v40, 7 }
  0x27   :  { %v100_v45 = vrot.slane %v98_v41, 7  ;;  %v110_v46 = vrot.slane %v108_v42, 7 }
  0x28   :  { %v97_v47 = vadd.f32 %v95_v43, %v466_v28  ;;  %v107_v48 = vadd.f32 %v105_v44, %v469_v31 }
  0x2a   :  { %v102_v49 = vadd.f32 %v100_v45, %v97_v47  ;;  %v112_v50 = vadd.f32 %v110_v46, %v107_v48 }
  0x2c   :  { %343 = vtanh.f32 %v102_v49 }
  0x2d   :  { %345 = vtanh.f32 %v112_v50 }
  0x32   :  { %v488_v51 = vpop.eup %343 }
  0x33   :  { %v490_v52 = vpop.eup %345  ;;  %v119_v53 = vmul.f32 %v488_v51, %v453_v17  ;;  %v129_v54 = vmul.f32 %v488_v51, %v460_v22 }
  0x34   :  { %v124_v55 = vmul.f32 %v490_v52, %v458_v21  ;;  %v134_v56 = vmul.f32 %v490_v52, %v463_v25 }
  0x35   :  { %v121_v57 = vrot.slane %v119_v53, 7  ;;  %v131_v58 = vrot.slane %v129_v54, 7  ;;  %v528_v53 = vstv %s332_s1  ;;  %v530_v54 = vstv %s333_s13 }
  0x36   :  { %v126_v59 = vrot.slane %v124_v55, 7  ;;  %v136_v60 = vrot.slane %v134_v56, 7  ;;  %v87_v55 = vmul.f32 %v474_v37, %v528_v53  ;;  %v89_v56 = vmul.f32 %v476_v38, %v530_v54 }
  0x37   :  { %v123_v61 = vadd.f32 %v121_v57, %v466_v28  ;;  %v133_v62 = vadd.f32 %v131_v58, %v469_v31  ;;  %v115_v57 = vmul.f32 %v488_v51, %v528_v53  ;;  %v116_v58 = vmul.f32 %v490_v52, %v530_v54 }
  0x39   :  { %v128_v63 = vadd.f32 %v126_v59, %v123_v61  ;;  %v138_v0 = vadd.f32 %v136_v60, %v133_v62  ;;  %v90_v61 = vadd.f32 %v89_v56, %v87_v55  ;;  %v542_v62 = vstv %s334_s14 }
  0x3b   :  { %347 = vtanh.f32 %v128_v63  ;;  %v117_v63 = vadd.f32 %v116_v58, %v115_v57  ;;  %v92_v37 = vadd.f32 %v542_v62, %v90_v61 }
  0x3c   :  { %349 = vtanh.f32 %v138_v0 }
  0x3d   :  { %v118_v38 = vadd.f32 %v117_v63, %v542_v62 }
  0x41   :  { %v348_v1 = vpop.eup %347 }
  0x42   :  { %v350_v2 = vpop.eup %349  ;;  %v145_v3 = vmul.f32 %v348_v1, %v453_v17  ;;  %v155_v4 = vmul.f32 %v348_v1, %v460_v22  ;;  %v141_v59 = vmul.f32 %v348_v1, %v528_v53 }
  0x43   :  { %v150_v5 = vmul.f32 %v350_v2, %v458_v21  ;;  %v160_v6 = vmul.f32 %v350_v2, %v463_v25  ;;  %v142_v60 = vmul.f32 %v350_v2, %v530_v54  ;;  %v276_v2 = vsel %vm275_vm0, %v92_v37, %v118_v38 }
  0x44   :  { %v147_v7 = vrot.slane %v145_v3, 7  ;;  %v157_v8 = vrot.slane %v155_v4, 7 }
  0x45   :  { %v152_v9 = vrot.slane %v150_v5, 7  ;;  %v162_v10 = vrot.slane %v160_v6, 7  ;;  %v143_v0 = vadd.f32 %v142_v60, %v141_v59 }
  0x46   :  { %v149_v11 = vadd.f32 %v147_v7, %v466_v28  ;;  %v159_v12 = vadd.f32 %v157_v8, %v469_v31 }
  0x47   :  { %v144_v51 = vadd.f32 %v143_v0, %v542_v62 }
  0x48   :  { %v154_v13 = vadd.f32 %v152_v9, %v149_v11  ;;  %v164_v14 = vadd.f32 %v162_v10, %v159_v12 }
  0x49   :  { %v278_v9 = vsel %vm277_vm1, %v276_v2, %v144_v51 }
  0x4a   :  { %351 = vtanh.f32 %v154_v13 }
  0x4b   :  { %353 = vtanh.f32 %v164_v14 }
  0x50   :  { %v508_v15 = vpop.eup %351 }
  0x51   :  { %v510_v16 = vpop.eup %353  ;;  %v171_v18 = vmul.f32 %v508_v15, %v453_v17  ;;  %v181_v19 = vmul.f32 %v508_v15, %v460_v22 }
  0x52   :  { %v176_v20 = vmul.f32 %v510_v16, %v458_v21  ;;  %v186_v23 = vmul.f32 %v510_v16, %v463_v25 }
  0x53   :  { %v173_v24 = vrot.slane %v171_v18, 7  ;;  %v183_v26 = vrot.slane %v181_v19, 7  ;;  %v167_v19 = vmul.f32 %v508_v15, %v528_v53 }
  0x54   :  { %v178_v27 = vrot.slane %v176_v20, 7  ;;  %v188_v29 = vrot.slane %v186_v23, 7  ;;  %v168_v20 = vmul.f32 %v510_v16, %v530_v54 }
  0x55   :  { %v175_v30 = vadd.f32 %v173_v24, %v466_v28  ;;  %v185_v32 = vadd.f32 %v183_v26, %v469_v31 }
  0x56   :  { %v169_v15 = vadd.f32 %v168_v20, %v167_v19 }
  0x57   :  { %v180_v33 = vadd.f32 %v178_v27, %v175_v30  ;;  %v190_v34 = vadd.f32 %v188_v29, %v185_v32 }
  0x59   :  { %355 = vtanh.f32 %v180_v33 }
  0x5a   :  { %357 = vtanh.f32 %v190_v34 }
  0x5f   :  { %v356_v35 = vpop.eup %355 }
  0x60   :  { %v358_v36 = vpop.eup %357  ;;  %v197_v39 = vmul.f32 %v356_v35, %v453_v17  ;;  %v207_v40 = vmul.f32 %v356_v35, %v460_v22  ;;  %v193_v32 = vmul.f32 %v356_v35, %v528_v53  ;;  %v170_v35 = vadd.f32 %v169_v15, %v542_v62 }
  0x61   :  { %v202_v41 = vmul.f32 %v358_v36, %v458_v21  ;;  %v212_v42 = vmul.f32 %v358_v36, %v463_v25  ;;  %v194_v33 = vmul.f32 %v358_v36, %v530_v54 }
  0x62   :  { %v199_v43 = vrot.slane %v197_v39, 7  ;;  %v209_v44 = vrot.slane %v207_v40, 7 }
  0x63   :  { %v204_v45 = vrot.slane %v202_v41, 7  ;;  %v214_v46 = vrot.slane %v212_v42, 7 }
  0x64   :  { %v201_v47 = vadd.f32 %v199_v43, %v466_v28  ;;  %v211_v48 = vadd.f32 %v209_v44, %v469_v31 }
  0x66   :  { %v206_v49 = vadd.f32 %v204_v45, %v201_v47  ;;  %v216_v50 = vadd.f32 %v214_v46, %v211_v48 }
  0x68   :  { %359 = vtanh.f32 %v206_v49 }
  0x69   :  { %361 = vtanh.f32 %v216_v50 }
  0x6e   :  { %v360_v3 = vpop.eup %359 }
  0x6f   :  { %v362_v4 = vpop.eup %361  ;;  %v223_v52 = vmul.f32 %v360_v3, %v453_v17  ;;  %v233_v1 = vmul.f32 %v360_v3, %v460_v22 }
  0x70   :  { %v228_v5 = vmul.f32 %v362_v4, %v458_v21  ;;  %v238_v6 = vmul.f32 %v362_v4, %v463_v25 }
  0x71   :  { %v225_v7 = vrot.slane %v223_v52, 7  ;;  %v235_v8 = vrot.slane %v233_v1, 7 }
  0x72   :  { %v230_v10 = vrot.slane %v228_v5, 7  ;;  %v240_v11 = vrot.slane %v238_v6, 7 }
  0x73   :  { %v227_v12 = vadd.f32 %v225_v7, %v466_v28  ;;  %v237_v13 = vadd.f32 %v235_v8, %v469_v31 }
  0x75   :  { %v232_v14 = vadd.f32 %v230_v10, %v227_v12  ;;  %v242_v18 = vadd.f32 %v240_v11, %v237_v13 }
  0x77   :  { %363 = vtanh.f32 %v232_v14 }
  0x78   :  { %365 = vtanh.f32 %v242_v18 }
  0x7d   :  { %v364_v23 = vpop.eup %363 }
  0x7e   :  { %v366_v24 = vpop.eup %365  ;;  %v249_v26 = vmul.f32 %v364_v23, %v453_v17  ;;  %v259_v27 = vmul.f32 %v364_v23, %v460_v22  ;;  %v219_v17 = vmul.f32 %v360_v3, %v528_v53  ;;  %v220_v22 = vmul.f32 %v362_v4, %v530_v54 }
  0x7f   :  { %v254_v29 = vmul.f32 %v366_v24, %v458_v21  ;;  %v264_v30 = vmul.f32 %v366_v24, %v463_v25  ;;  %v195_v21 = vadd.f32 %v194_v33, %v193_v32  ;;  %v245_v36 = vmul.f32 %v364_v23, %v528_v53 }
  0x80   :  { %v251_v34 = vrot.slane %v249_v26, 7  ;;  %v261_v39 = vrot.slane %v259_v27, 7  ;;  %v246_v44 = vmul.f32 %v366_v24, %v530_v54  ;;  %v221_v45 = vadd.f32 %v220_v22, %v219_v17 }
  0x81   :  { %v256_v40 = vrot.slane %v254_v29, 7  ;;  %v266_v41 = vrot.slane %v264_v30, 7 }
  0x82   :  { %v253_v16 = vadd.f32 %v251_v34, %v466_v28  ;;  %v263_v42 = vadd.f32 %v261_v39, %v469_v31  ;;  %v196_v28 = vadd.f32 %v195_v21, %v542_v62  ;;  %v280_v31 = vsel %vm279_vm2, %v278_v9, %v170_v35 }
  0x83   :  { %v247_v46 = vadd.f32 %v246_v44, %v245_v36  ;;  %v222_v47 = vadd.f32 %v221_v45, %v542_v62 }
  0x84   :  { %v258_v43 = vadd.f32 %v256_v40, %v253_v16  ;;  %v268_v25 = vadd.f32 %v266_v41, %v263_v42  ;;  %v282_v48 = vsel %vm281_vm3, %v280_v31, %v196_v28 }
  0x85   :  { %v248_v56 = vadd.f32 %v247_v46, %v542_v62  ;;  %v284_v60 = vsel %vm283_vm4, %v282_v48, %v222_v47 }
  0x86   :  { %367 = vtanh.f32 %v258_v43 }
  0x87   :  { %369 = vtanh.f32 %v268_v25  ;;  %v286_v0 = vsel %vm285_vm6, %v284_v60, %v248_v56 }
  0x8c   :  { %v368_v49 = vpop.eup %367 }
  0x8d   :  { %v370_v50 = vpop.eup %369  ;;  %v292_v55 = vrot.slane %v368_v49, 7  ;;  %v271_v57 = vmul.f32 %v368_v49, %v528_v53 }
  0x8e   :  { %v295_v58 = vrot.slane %v370_v50, 6  ;;  %v272_v59 = vmul.f32 %v370_v50, %v530_v54 }
  0x90   :  { %v297_v61 = vsel %vm275_vm0, %v292_v55, %v295_v58  ;;  %v273_v63 = vadd.f32 %v272_v59, %v271_v57 }
  0x91   :  { %299 = vst.msk [vmem:[#allocation5] sm:$0x3] %vm298_vm5, %v297_v61 }
  0x92   :  { %v274_v37 = vadd.f32 %v273_v63, %v542_v62  ;;  %312 = dma.vmem_to_hbm [thread:$0]  %s308_s16, 32, %s310_s19, [#allocation3]  }
  0x94   :  { %v288_v38 = vsel %vm287_vm7, %v286_v0, %v274_v37 }
  0x95   :  { %290 = vst.msk [vmem:[%s587_s3] sm:$0xff] %vm289_vm8, %v288_v38 }
  0x96   :  { %409 = dma.done.wait [#allocation3], 32  }
  0x97   :  { %410 = vsyncadd [#allocation3], 4294967264 }
  0x98   :  { %319 = vsyncpa [#allocation3], 1 }
  0x99   :  { %320 = vsyncpa [#allocation4], 1 }

</bundles_post_ra>
